<compile_context>
chip_gen: v7x
topology: tpu7x:2x2x1
jax: 0.10.0
libtpu: 0.0.40
codegen_flags: <defaults>
</compile_context>

<pallas_src>
import jax
import jax.numpy as jnp
from jax.experimental import pallas as pl
from jax.experimental.pallas import tpu as pltpu


def _item_to_interest_kernel(x_ref, theta_ref, o_ref, acc_ref, m_ref, l_ref):
    # x_ref:     (TB, TS, H)  native dtype (f32 or bf16)
    # theta_ref: (H, K)       same dtype as x
    # o_ref:     (TB, K, H)
    # acc_ref:   (TB, K, H)   f32 scratch (unnormalised D^T @ x accumulator)
    # m_ref:     (TB, 1, K)   f32 scratch (running max over S)
    # l_ref:     (TB, 1, K)   f32 scratch (running softmax denominator)
    s_idx = pl.program_id(1)

    @pl.when(s_idx == 0)
    def _init():
        acc_ref[...] = jnp.zeros_like(acc_ref)
        m_ref[...] = jnp.full_like(m_ref, -jnp.inf)
        l_ref[...] = jnp.zeros_like(l_ref)

    x_all = x_ref[...]                          # (TB, TS, H)
    theta = theta_ref[...]                      # (H, K)
    tb, ts, h = x_all.shape

    # Scores for the whole block: one MXU matmul with M = TB*TS rows.  TS is
    # sublane-aligned by the block chooser, so the reshape is layout-free.
    scores2d = jnp.dot(x_all.reshape(tb * ts, h), theta,
                       preferred_element_type=jnp.float32)   # (TB*TS, K) f32

    # Per-batch online-softmax update.  TB <= 8, so this static unroll stays
    # small; every op below is a cheap 2-D tile op (known-good Mosaic forms).
    for b in range(tb):
        sb = scores2d[b * ts:(b + 1) * ts, :]   # (TS, K) f32 static slice
        xb = x_ref[b]                           # (TS, H) native dtype

        m_prev = m_ref[b]                       # (1, K)
        m_new = jnp.maximum(m_prev, jnp.max(sb, axis=0, keepdims=True))
        alpha = jnp.exp(m_prev - m_new)         # (1, K): rescale of old partials
        p = jnp.exp(sb - m_new)                 # (TS, K) f32 unnormalised weights

        l_ref[b] = alpha * l_ref[b] + jnp.sum(p, axis=0, keepdims=True)
        m_ref[b] = m_new

        # p^T @ x as a contraction over TS (no explicit (TS,K)->(K,TS) transpose).
        pv = jax.lax.dot_general(
            p.astype(xb.dtype), xb,
            dimension_numbers=(((0,), (0,)), ((), ())),
            preferred_element_type=jnp.float32,
        )                                       # (K, H) f32
        acc_ref[b] = jnp.transpose(alpha) * acc_ref[b] + pv

    # Finalize: exact normalisation, write the (TB, K, H) output block (H last
    # => the HBM writeback of the block is lane-dense).
    @pl.when(s_idx == pl.num_programs(1) - 1)
    def _finalize():
        for b in range(tb):
            inv = pl.reciprocal(l_ref[b], approx=False)       # (1, K) exact
            o_ref[b] = (acc_ref[b] * jnp.transpose(inv)).astype(o_ref.dtype)


def _round_up(v, m):
    return ((v + m - 1) // m) * m


def _vmem_budget_and_limit():
    """Generation-dependent VMEM sizing: (block budget, compiler scoped limit)."""
    try:
        cap = int(pltpu.get_tpu_info().vmem_capacity_bytes)
    except Exception:
        cap = 64 * 1024 * 1024                  # conservative: v7x per-core VMEM
    try:
        kind = jax.devices()[0].device_kind.lower()
    except Exception:
        kind = ""
    is_v7 = ("v7" in kind) or ("7x" in kind)
    if cap >= 96 * 1024 * 1024 and not is_v7:   # v5e / v6e: 128 MiB VMEM
        return 96 * 1024 * 1024, 112 * 1024 * 1024
    return 36 * 1024 * 1024, 48 * 1024 * 1024   # v7x: 64 MiB per TensorCore


def _vmem_footprint(tb, ts, h, k, itemsize):
    """Honest per-step VMEM estimate: padded, double-buffered blocks + temps."""
    h_lane = _round_up(h, 128)
    k_lane = _round_up(k, 128)
    k_sub = _round_up(k, 8)
    h_sub = _round_up(h, 8)
    sub = 8 if itemsize >= 4 else 16
    ts_sub = _round_up(ts, sub)
    x_blk = 2 * tb * ts_sub * h_lane * itemsize     # x block, double-buffered
    x_val = tb * ts_sub * h_lane * itemsize         # merged (TB*TS, H) value copy
    th_blk = 2 * h_sub * k_lane * itemsize          # theta block, double-buffered
    o_blk = 2 * tb * k_sub * h_lane * itemsize      # out block, double-buffered
    acc = tb * k_sub * h_lane * 4                   # f32 accumulator scratch
    stats = 2 * tb * 8 * k_lane * 4                 # running max / denom scratch
    temps = 2 * tb * ts_sub * k_lane * 4            # f32 scores + exp temporaries
    return x_blk + x_val + th_blk + o_blk + acc + stats + temps


def _choose_blocks(B, S, H, K, itemsize, vmem_budget):
    """Pick (tb, ts) batch / sequence block sizes."""
    # Batch block: small (<=8) so the in-kernel unroll stays cheap and the grid
    # has many steps; keep >=2 batch-grid steps (even count preferred) when
    # B >= 2 so both v7x TensorCores get balanced work (no-op on v5e/v6e).
    tb_cap = min(B, 8)
    if B >= 2:
        tb_cap = min(tb_cap, B // 2)
    divs = [d for d in range(1, tb_cap + 1) if B % d == 0]
    even = [d for d in divs if (B // d) % 2 == 0]
    tb = max(even) if even else max(divs)

    # Sequence block: largest S divisor whose x slab stays <= ~4 MiB and whose
    # total footprint fits the budget; sublane-aligned (layout-free reshape)
    # unless it must equal the full S.
    sub = 8 if itemsize >= 4 else 16
    h_lane = _round_up(H, 128)
    target_slab = 4 * 1024 * 1024
    candidates = [d for d in range(1, S + 1)
                  if S % d == 0 and (d % sub == 0 or d == S)]
    feasible = [t for t in candidates
                if _vmem_footprint(tb, t, H, K, itemsize) <= vmem_budget]
    if not feasible:
        # TODO(synk): no sublane-aligned S divisor fits the budget (huge H or an
        # awkward prime S); fall back to the smallest candidate and rely on
        # vmem_limit_bytes.
        return tb, min(candidates)
    small = [t for t in feasible
             if tb * _round_up(t, sub) * h_lane * itemsize <= target_slab]
    return tb, (max(small) if small else min(feasible))


def item_to_interest_aggregation(x, theta, *, block_b=None, block_s=None):
    """x: (B, S, H), theta: (H, K) -> (B, K, H).  Supports f32 or bf16 x."""
    B, S, H = x.shape
    H2, K = theta.shape
    assert H == H2, (H, H2)
    theta = theta.astype(x.dtype)

    vmem_budget, vmem_limit = _vmem_budget_and_limit()
    tb, ts = _choose_blocks(B, S, H, K, x.dtype.itemsize, vmem_budget)
    if block_b is not None:
        tb = block_b
    if block_s is not None:
        ts = block_s
    assert B % tb == 0 and S % ts == 0, (B, tb, S, ts)
    grid = (B // tb, S // ts)

    return pl.pallas_call(
        _item_to_interest_kernel,
        out_shape=jax.ShapeDtypeStruct((B, K, H), x.dtype),
        grid_spec=pltpu.PrefetchScalarGridSpec(
            num_scalar_prefetch=0,
            grid=grid,
            in_specs=[
                pl.BlockSpec((tb, ts, H), lambda i, s: (i, s, 0)),
                pl.BlockSpec((H, K), lambda i, s: (0, 0)),   # VMEM-resident theta
            ],
            out_specs=pl.BlockSpec((tb, K, H), lambda i, s: (i, 0, 0)),
            scratch_shapes=[
                pltpu.VMEM((tb, K, H), jnp.float32),   # unnormalised accumulator
                pltpu.VMEM((tb, 1, K), jnp.float32),   # running max over S
                pltpu.VMEM((tb, 1, K), jnp.float32),   # running denominator
            ],
        ),
        compiler_params=pltpu.CompilerParams(
            dimension_semantics=("parallel", "arbitrary"),
            vmem_limit_bytes=vmem_limit,
        ),
    )(x, theta)


def reference(x, theta):
    x32 = x.astype(jnp.float32)
    t32 = theta.astype(jnp.float32)
    scores = jnp.einsum("bsh,hk->bsk", x32, t32,
                        precision=jax.lax.Precision.HIGHEST)
    d = jax.nn.softmax(scores, axis=-2)
    return jnp.einsum("bsh,bsk->bkh", x32, d,
                      precision=jax.lax.Precision.HIGHEST)


if __name__ == "__main__":
    key = jax.random.PRNGKey(0)
    k_x, k_theta, k_x2 = jax.random.split(key, 3)

    # Shapes implied by the module: (batch, seq_len, hidden) x, (hidden, k) theta.
    B, S, H, K = 2, 8, 32, 5
    x = jax.random.normal(k_x, (B, S, H), dtype=jnp.float32)
    theta = jax.random.normal(k_theta, (H, K), dtype=jnp.float32)  # torch.randn([H, K])

    ref = reference(x, theta)

    # 1) f32 path, automatic block selection (single sequence step here).
    out = item_to_interest_aggregation(x, theta)
    jax.block_until_ready(out)
    assert out.shape == (B, K, H)
    assert jnp.allclose(out, ref, atol=2e-3, rtol=2e-3)

    # 2) Multi-step online-softmax path: force S tiling (4 sequence steps).
    S2 = 64
    x2 = jax.random.normal(k_x2, (B, S2, H), dtype=jnp.float32)
    ref2 = reference(x2, theta)
    out2 = item_to_interest_aggregation(x2, theta, block_s=16)
    jax.block_until_ready(out2)
    assert out2.shape == (B, K, H)
    assert jnp.allclose(out2, ref2, atol=2e-3, rtol=2e-3)

    # 3) bf16 bandwidth path (halves HBM traffic for x; f32 stats/accumulation).
    out_bf16 = item_to_interest_aggregation(x.astype(jnp.bfloat16), theta)
    jax.block_until_ready(out_bf16)
    assert out_bf16.shape == (B, K, H)
    assert jnp.allclose(out_bf16.astype(jnp.float32), ref, atol=2e-1, rtol=2e-1)

    print("KERNEL_OK")
</pallas_src>

<mosaic_0001>
module attributes {stable_mosaic.version = 11 : i64} {
  func.func @_item_to_interest_kernel(%arg0: i32, %arg1: i32, %arg2: memref<1x8x32xf32, #tpu.memory_space<vmem>>, %arg3: memref<32x5xf32, #tpu.memory_space<vmem>>, %arg4: memref<1x5x32xf32, #tpu.memory_space<vmem>>, %arg5: memref<1x5x32xf32, #tpu.memory_space<vmem>>, %arg6: memref<1x1x5xf32, #tpu.memory_space<vmem>>, %arg7: memref<1x1x5xf32, #tpu.memory_space<vmem>>) attributes {dimension_semantics = [#tpu.dimension_semantics<parallel>, #tpu.dimension_semantics<arbitrary>], iteration_bounds = array<i64: 2, 1>, scalar_prefetch = 0 : i64, scratch_operands = 3 : i64, tpu.core_type = #tpu.core_type<tc>, window_params = [{transform_indices = @transform_0, window_bounds = array<i64: 1, 8, 32>}, {pipeline_mode = #tpu.pipeline_mode<synchronous>, transform_indices = @transform_1, window_bounds = array<i64: 32, 5>}, {transform_indices = @transform_2, window_bounds = array<i64: 1, 5, 32>}]} {
    %c0_i32 = arith.constant 0 : i32
    %0 = arith.cmpi eq, %arg1, %c0_i32 : i32
    %1 = arith.extui %0 : i1 to i32
    %c0_i32_0 = arith.constant 0 : i32
    %2 = arith.cmpi ne, %1, %c0_i32_0 : i32
    scf.if %2 {
      %cst_31 = arith.constant 0.000000e+00 : f32
      %44 = vector.broadcast %cst_31 : f32 to vector<1x5x32xf32>
      %c0_32 = arith.constant 0 : index
      %c0_33 = arith.constant 0 : index
      %c0_34 = arith.constant 0 : index
      %45 = vector.load %arg5[%c0_32, %c0_33, %c0_34] : memref<1x5x32xf32, #tpu.memory_space<vmem>>, vector<1x5x32xf32>
      tpu.vector_store %arg5[%c0_32, %c0_33, %c0_34], %44 {strides = array<i32>} : memref<1x5x32xf32, #tpu.memory_space<vmem>>, vector<1x5x32xf32>,
      %cst_35 = arith.constant 0xFF800000 : f32
      %46 = vector.broadcast %cst_35 : f32 to vector<1x1x5xf32>
      %c0_36 = arith.constant 0 : index
      %c0_37 = arith.constant 0 : index
      %c0_38 = arith.constant 0 : index
      %47 = vector.load %arg6[%c0_36, %c0_37, %c0_38] : memref<1x1x5xf32, #tpu.memory_space<vmem>>, vector<1x1x5xf32>
      tpu.vector_store %arg6[%c0_36, %c0_37, %c0_38], %46 {strides = array<i32>} : memref<1x1x5xf32, #tpu.memory_space<vmem>>, vector<1x1x5xf32>,
      %cst_39 = arith.constant 0.000000e+00 : f32
      %48 = vector.broadcast %cst_39 : f32 to vector<1x1x5xf32>
      %c0_40 = arith.constant 0 : index
      %c0_41 = arith.constant 0 : index
      %c0_42 = arith.constant 0 : index
      %49 = vector.load %arg7[%c0_40, %c0_41, %c0_42] : memref<1x1x5xf32, #tpu.memory_space<vmem>>, vector<1x1x5xf32>
      tpu.vector_store %arg7[%c0_40, %c0_41, %c0_42], %48 {strides = array<i32>} : memref<1x1x5xf32, #tpu.memory_space<vmem>>, vector<1x1x5xf32>,
    } else {
    }
    %c0 = arith.constant 0 : index
    %c0_1 = arith.constant 0 : index
    %c0_2 = arith.constant 0 : index
    %3 = vector.load %arg2[%c0, %c0_1, %c0_2] : memref<1x8x32xf32, #tpu.memory_space<vmem>>, vector<1x8x32xf32>
    %c0_3 = arith.constant 0 : index
    %c0_4 = arith.constant 0 : index
    %4 = vector.load %arg3[%c0_3, %c0_4] : memref<32x5xf32, #tpu.memory_space<vmem>>, vector<32x5xf32>
    %5 = vector.shape_cast %3 : vector<1x8x32xf32> to vector<8x32xf32>
    %cst = arith.constant dense<0.000000e+00> : vector<8x5xf32>
    %6 = tpu.matmul %5, %4, %cst {dimension_numbers = #tpu.dot_dimension_numbers<[1], [0], [0], [1], [0, 0, 1, 1], [], []>} : vector<8x32xf32>, vector<32x5xf32>, vector<8x5xf32> -> vector<8x5xf32>
    %c0_5 = arith.constant 0 : index
    %c0_6 = arith.constant 0 : index
    %c0_7 = arith.constant 0 : index
    %7 = vector.load %arg2[%c0_5, %c0_6, %c0_7] : memref<1x8x32xf32, #tpu.memory_space<vmem>>, vector<1x8x32xf32>
    %8 = vector.shape_cast %7 : vector<1x8x32xf32> to vector<8x32xf32>
    %c0_8 = arith.constant 0 : index
    %c0_9 = arith.constant 0 : index
    %c0_10 = arith.constant 0 : index
    %9 = vector.load %arg6[%c0_8, %c0_9, %c0_10] : memref<1x1x5xf32, #tpu.memory_space<vmem>>, vector<1x1x5xf32>
    %10 = vector.shape_cast %9 : vector<1x1x5xf32> to vector<1x5xf32>
    %cst_11 = arith.constant dense<0xFF800000> : vector<5xf32>
    %11 = vector.multi_reduction <maximumf>, %6, %cst_11 [0] : vector<8x5xf32> to vector<5xf32>
    %12 = vector.shape_cast %11 : vector<5xf32> to vector<1x5xf32>
    %13 = arith.maximumf %10, %12 : vector<1x5xf32>
    %14 = arith.subf %10, %13 : vector<1x5xf32>
    %15 = math.exp %14 : vector<1x5xf32>
    %16 = vector.broadcast %13 : vector<1x5xf32> to vector<8x5xf32>
    %17 = arith.subf %6, %16 : vector<8x5xf32>
    %18 = math.exp %17 : vector<8x5xf32>
    %c0_12 = arith.constant 0 : index
    %c0_13 = arith.constant 0 : index
    %c0_14 = arith.constant 0 : index
    %19 = vector.load %arg7[%c0_12, %c0_13, %c0_14] : memref<1x1x5xf32, #tpu.memory_space<vmem>>, vector<1x1x5xf32>
    %20 = vector.shape_cast %19 : vector<1x1x5xf32> to vector<1x5xf32>
    %21 = arith.mulf %15, %20 : vector<1x5xf32>
    %cst_15 = arith.constant dense<0.000000e+00> : vector<5xf32>
    %22 = vector.multi_reduction <add>, %18, %cst_15 [0] : vector<8x5xf32> to vector<5xf32>
    %23 = vector.shape_cast %22 : vector<5xf32> to vector<1x5xf32>
    %24 = arith.addf %21, %23 : vector<1x5xf32>
    %c0_16 = arith.constant 0 : index
    %c0_17 = arith.constant 0 : index
    %c0_18 = arith.constant 0 : index
    %25 = vector.load %arg7[%c0_16, %c0_17, %c0_18] : memref<1x1x5xf32, #tpu.memory_space<vmem>>, vector<1x1x5xf32>
    %26 = vector.shape_cast %25 : vector<1x1x5xf32> to vector<1x5xf32>
    %27 = vector.shape_cast %24 : vector<1x5xf32> to vector<1x1x5xf32>
    tpu.vector_store %arg7[%c0_16, %c0_17, %c0_18], %27 {strides = array<i32>} : memref<1x1x5xf32, #tpu.memory_space<vmem>>, vector<1x1x5xf32>,
    %c0_19 = arith.constant 0 : index
    %c0_20 = arith.constant 0 : index
    %c0_21 = arith.constant 0 : index
    %28 = vector.load %arg6[%c0_19, %c0_20, %c0_21] : memref<1x1x5xf32, #tpu.memory_space<vmem>>, vector<1x1x5xf32>
    %29 = vector.shape_cast %28 : vector<1x1x5xf32> to vector<1x5xf32>
    %30 = vector.shape_cast %13 : vector<1x5xf32> to vector<1x1x5xf32>
    tpu.vector_store %arg6[%c0_19, %c0_20, %c0_21], %30 {strides = array<i32>} : memref<1x1x5xf32, #tpu.memory_space<vmem>>, vector<1x1x5xf32>,
    %cst_22 = arith.constant dense<0.000000e+00> : vector<5x32xf32>
    %31 = tpu.matmul %18, %8, %cst_22 {dimension_numbers = #tpu.dot_dimension_numbers<[0], [0], [1], [1], [0, 1, 1, 1], [], []>} : vector<8x5xf32>, vector<8x32xf32>, vector<5x32xf32> -> vector<5x32xf32>
    %32 = tpu.transpose %15, [1, 0] : vector<1x5xf32> -> vector<5x1xf32>
    %c0_23 = arith.constant 0 : index
    %c0_24 = arith.constant 0 : index
    %c0_25 = arith.constant 0 : index
    %33 = vector.load %arg5[%c0_23, %c0_24, %c0_25] : memref<1x5x32xf32, #tpu.memory_space<vmem>>, vector<1x5x32xf32>
    %34 = vector.shape_cast %33 : vector<1x5x32xf32> to vector<5x32xf32>
    %35 = vector.broadcast %32 : vector<5x1xf32> to vector<5x32xf32>
    %36 = arith.mulf %35, %34 : vector<5x32xf32>
    %37 = arith.addf %36, %31 : vector<5x32xf32>
    %c0_26 = arith.constant 0 : index
    %c0_27 = arith.constant 0 : index
    %c0_28 = arith.constant 0 : index
    %38 = vector.load %arg5[%c0_26, %c0_27, %c0_28] : memref<1x5x32xf32, #tpu.memory_space<vmem>>, vector<1x5x32xf32>
    %39 = vector.shape_cast %38 : vector<1x5x32xf32> to vector<5x32xf32>
    %40 = vector.shape_cast %37 : vector<5x32xf32> to vector<1x5x32xf32>
    tpu.vector_store %arg5[%c0_26, %c0_27, %c0_28], %40 {strides = array<i32>} : memref<1x5x32xf32, #tpu.memory_space<vmem>>, vector<1x5x32xf32>,
    %c0_i32_29 = arith.constant 0 : i32
    %41 = arith.cmpi eq, %arg1, %c0_i32_29 : i32
    %42 = arith.extui %41 : i1 to i32
    %c0_i32_30 = arith.constant 0 : i32
    %43 = arith.cmpi ne, %42, %c0_i32_30 : i32
    scf.if %43 {
      %c0_31 = arith.constant 0 : index
      %c0_32 = arith.constant 0 : index
      %c0_33 = arith.constant 0 : index
      %44 = vector.load %arg7[%c0_31, %c0_32, %c0_33] : memref<1x1x5xf32, #tpu.memory_space<vmem>>, vector<1x1x5xf32>
      %45 = vector.shape_cast %44 : vector<1x1x5xf32> to vector<1x5xf32>
      %46 = tpu.reciprocal %45 : vector<1x5xf32> -> vector<1x5xf32>
      %c0_34 = arith.constant 0 : index
      %c0_35 = arith.constant 0 : index
      %c0_36 = arith.constant 0 : index
      %47 = vector.load %arg5[%c0_34, %c0_35, %c0_36] : memref<1x5x32xf32, #tpu.memory_space<vmem>>, vector<1x5x32xf32>
      %48 = vector.shape_cast %47 : vector<1x5x32xf32> to vector<5x32xf32>
      %49 = tpu.transpose %46, [1, 0] : vector<1x5xf32> -> vector<5x1xf32>
      %50 = vector.broadcast %49 : vector<5x1xf32> to vector<5x32xf32>
      %51 = arith.mulf %48, %50 : vector<5x32xf32>
      %c0_37 = arith.constant 0 : index
      %c0_38 = arith.constant 0 : index
      %c0_39 = arith.constant 0 : index
      %52 = vector.load %arg4[%c0_37, %c0_38, %c0_39] : memref<1x5x32xf32, #tpu.memory_space<vmem>>, vector<1x5x32xf32>
      %53 = vector.shape_cast %52 : vector<1x5x32xf32> to vector<5x32xf32>
      %54 = vector.shape_cast %51 : vector<5x32xf32> to vector<1x5x32xf32>
      tpu.vector_store %arg4[%c0_37, %c0_38, %c0_39], %54 {strides = array<i32>} : memref<1x5x32xf32, #tpu.memory_space<vmem>>, vector<1x5x32xf32>,
    } else {
    }
    return
  }
  func.func @transform_0(%arg0: i32, %arg1: i32) -> (i32, i32, i32) {
    %c0_i32 = arith.constant 0 : i32
    %c0_i32_0 = arith.constant 0 : i32
    return %arg0, %arg1, %c0_i32 : i32, i32, i32
  }
  func.func @transform_1(%arg0: i32, %arg1: i32) -> (i32, i32) {
    %c0_i32 = arith.constant 0 : i32
    %c0_i32_0 = arith.constant 0 : i32
    %c0_i32_1 = arith.constant 0 : i32
    return %c0_i32, %c0_i32_0 : i32, i32
  }
  func.func @transform_2(%arg0: i32, %arg1: i32) -> (i32, i32, i32) {
    %c0_i32 = arith.constant 0 : i32
    %c0_i32_0 = arith.constant 0 : i32
    %c0_i32_1 = arith.constant 0 : i32
    return %arg0, %c0_i32, %c0_i32_0 : i32, i32, i32
  }
}

</mosaic_0001>

<bundles_post_ra>
// kernel: tpu_custom_call.1
= control target key start
LH: loop header
LB: loop body
LE: loop exit
PB: predicated region body
PF: predicated region fallthrough
CT: control target
= control target key end

     0   :  { %s663_s9 = smov 0   ;;  %s665_s10 = smov 0   ;;  %s724_s0 = inlined_call_operand.vmem [shape: f32[2,8,32], index: 0, kind: input, shape index: {}]   ;;  %s725_s1 = inlined_call_operand.vmem [shape: f32[32,5], index: 1, kind: input, shape index: {}]   ;;  %s726_s2 = inlined_call_operand.vmem [shape: f32[2,5,32], index: 2, kind: output, shape index: {}]  }
   0x1   :  { %s667_s11 = smov 0  }
   0x2 LB: > { %s24_s12 = sadd.s32 1, %s637_s10  ;;  %p546_p0 = scmp.ge.s32.totalorder %s641_s11, 1  ;;  %s641_s11 = sphi %s667_s11, %s12_s11   ;;  %s637_s10 = sphi %s665_s10, %s728_s10   ;;  %s633_s9 = sphi %s663_s9, %s727_s9  }
   0x3   : > { %p26_p1 = scmp.ge.s32.totalorder %s24_s12, 2  ;;  %p128_p2 = scmp.lt.s32.totalorder %s641_s11, 3 }
   0x5   : > { %s730_s12 = smov (%p26_p1, %s24_s12), 0  ;;  %p129_p3 = pnand %p546_p0, %p128_p2 }
   0x6   : > { %v172_v0 = vld [vmem:[%s725_s1] sm:$0xff] (!%p129_p3)  ;;  %v173_v1 = vld [vmem:[%s725_s1 + $0x8] sm:$0xff] (!%p129_p3)  ;;  %v174_v2 = vld [vmem:[%s725_s1 + $0x10] sm:$0xff] (!%p129_p3)  ;;  %vm166_vm0 = vcmask (!%p129_p3), 258048   ;;  %v643_v3 = vmov (!%p129_p3), 0.0|0.0   ;;  %v644_v6 = vmov (!%p129_p3), 0.0   ;;  %v264_v15 = vlaneseq (!%p129_p3) }
   0x7   : > { %132 = sbr.rel (%p129_p3) target bundleno = 616 (0x268), region = 28  ;;  %576 = vmatprep.subr.bf16.mxu0 (!%p129_p3), %v643_v3  ;;  %v577_v4 = vpack.c.bf16 (!%p129_p3), %v173_v1, %v172_v0  ;;  %v175_v5 = vld [vmem:[%s725_s1 + $0x18] sm:$0xff] (!%p129_p3)  ;;  %167 = vst.msk [vmem:[#allocation2] sm:$0x1f] (!%p129_p3), %vm166_vm0, %v644_v6  ;;  %vm168_vm1 = vcmask (!%p129_p3), 32768   ;;  %p151_p4 = scmp.lt.s32.totalorder (!%p129_p3), %s633_s9, 1  ;;  %571 = vmatprep.subr.mxu1 (!%p129_p3), %v644_v6 }
   0x8   : > { %170 = vst.msk [vmem:[#allocation4] sm:$0x1] (!%p129_p3), %vm168_vm1, %v644_v6  ;;  %vm645_vm2 = vmmov (!%p129_p3), 0   ;;  %v580_v7 = vpack.c.bf16 (!%p129_p3), %v175_v5, %v174_v2  ;;  %v646_v8 = vmov (!%p129_p3), -inf   ;;  %vm176_vm3 = vcmask (!%p129_p3), 261120  }
   0x9   : > { %568 = vmatprep.mubr.msk.f32.mxu0 (!%p129_p3), %vm645_vm2, %v644_v6  ;;  %573 = vmatprep.mubr.msk.f32.mxu1 (!%p129_p3), %vm645_vm2, %v644_v6  ;;  %169 = vst.msk [vmem:[#allocation3] sm:$0x1] (!%p129_p3), %vm168_vm1, %v646_v8  ;;  %vm251_vm4 = vcmask (!%p129_p3), 39936   ;;  %v265_v18 = vshrl.u32 (!%p129_p3), %v264_v15, 7  ;;  %v647_v43 = vmov (!%p129_p3), 0   ;;  %vm317_vm5 = vcmask (!%p129_p3), 64512  }
   0xa   : > { %578 = vmatpush3.bf16.msra.mxu0 (!%p129_p3), %v577_v4 }
   0xb   : > { %579 = vmatprep.subr.bf16.mxu0 (!%p129_p3), %v643_v3  ;;  %v266_v22 = vsub.s32 (!%p129_p3), 0, %v265_v18 }
   0xe   : > { %s732_s9 = smov (!%p151_p4, %s633_s9), 1  ;;  %581 = vmatpush3.bf16.msra.mxu0 %v580_v7  ;;  %v423_v47 = vld [vmem:[#allocation2] sm:$0x1f] }
   0xf   : > { %s547_s21 = sshll.u32 %s732_s9, 3  ;;  %v272_v36 = vld [vmem:[#allocation4] sm:$0x1] }
  0x10   : > { %s157_s24 = scalar_lea.vmem %s724_s0, %s547_s21  ;;  %v250_v20 = vld [vmem:[#allocation3] sm:$0x1]  ;;  %s161_s27 = scalar_lea.vmem %s726_s2, %s547_s21 }
  0x11   : > { %v171_v9 = vld [vmem:[%s157_s24] sm:$0xff] }
  0x12   : > { %572 = vmatpush3.msra.mxu1 %v171_v9  ;;  %569 = vmatmul.mubr.msk.f32.vlgmr.msra.gmra.mrb[0].mxu0 %vm176_vm3, %v171_v9 }
  0xe5   : > { %v246_v10 = vpop.f32.mrb[0].mxu0 }
  0xe6   : > { %v252_v11 = vsel %vm251_vm4, %v246_v10, -inf  ;;  %v570_v12 = vpop.f32.mrb[1].mxu0 }
  0xe7   : > { %v253_v13 = vrot.slane %v252_v11, 4 }
  0xe9   : > { %v254_v14 = vmax.f32 %v252_v11, %v253_v13 }
  0xeb   : > { %v255_v16 = vrot.slane %v254_v14, 2 }
  0xed   : > { %v256_v17 = vmax.f32 %v254_v14, %v255_v16 }
  0xef   : > { %v257_v19 = vrot.slane %v256_v17, 1 }
  0xf1   : > { %v258_v21 = vmax.f32 %v256_v17, %v257_v19 }
  0xf3   : > { %v259_v23 = vmax.f32 %v250_v20, %v258_v21 }
  0xf5   : > { %v267_v24 = vrot.slane %v259_v23, %v266_v22  ;;  %284 = vst.msk [vmem:[#allocation3] sm:$0x1] %vm168_vm1, %v259_v23  ;;  %v260_v26 = vsub.f32 %v250_v20, %v259_v23 }
  0xf7   : > { %v269_v25 = vsub.f32 %v246_v10, %v267_v24  ;;  %v261_v28 = vmul.f32 1.442695, %v260_v26 }
  0xf9   : > { %v270_v27 = vmul.f32 1.442695, %v269_v25 }
  0xfb   : > { %613 = vpow2.f32 %v270_v27 }
  0xfc   : > { %615 = vpow2.f32 %v261_v28 }
 0x105   : > { %v614_v29 = vpop.eup %613 }
 0x106   : > { %v274_v30 = vsel %vm251_vm4, %v614_v29, 0.0  ;;  %285 = vxpose.xlu0.b32.start.end [1/1] (short) (narrow) %v614_v29, 8  ;;  %v616_v32 = vpop.eup %615 }
 0x107   : > { %v275_v31 = vrot.slane %v274_v30, 4  ;;  %v273_v39 = vmul.f32 %v616_v32, %v272_v36 }
 0x109   : > { %v276_v33 = vadd.f32 %v275_v31, %v274_v30 }
 0x10a   : > { %391 = vxpose.xlu0.b32.start.end [1/1] (short) (narrow) %v616_v32, 8 }
 0x10b   : > { %v277_v34 = vrot.slane %v276_v33, 2 }
 0x10d   : > { %v278_v35 = vadd.f32 %v277_v34, %v276_v33 }
 0x10f   : > { %v279_v37 = vrot.slane %v278_v35, 1 }
 0x111   : > { %v280_v38 = vadd.f32 %v279_v37, %v278_v35 }
 0x113   : > { %v281_v40 = vadd.f32 %v280_v38, %v273_v39 }
 0x115   : > { %283 = vst.msk [vmem:[#allocation4] sm:$0x1] %vm168_vm1, %v281_v40 }
 0x11c   : > { %v436_v41 = vld [vmem:[#allocation4] sm:$0x1] }
 0x11d   : > { %617 = vrcp.f32 %v436_v41 }
 0x127   : > { %v618_v42 = vpop.eup %617 }
 0x128   : > { %439 = vxpose.xlu1.b32.start.end [1/1] (short) (narrow) %v618_v42, 8 }
 0x133   : > { %612 = vset.pattern.permute.xlu0 %v647_v43 }
 0x146   : > { %611 = vset.pattern.permute.xlu1 %v647_v43 }
 0x186   : > { %v301_v44 = vpop.trf.xlu0 }
 0x187   : > { %574 = vmatmul.mubr.msk.f32.vlgmr.msra.gmra.mrb[0].mxu1 %vm317_vm5, %v301_v44 }
 0x18a   : > { %v407_v45 = vpop.trf.xlu0 }
 0x18b   : > { %426 = vperm.xlu1 %611, %v407_v45  }
 0x1a8   : > { %v455_v46 = vpop.trf.xlu1 }
 0x1a9   : > { %473 = vperm.xlu0 %612, %v455_v46  }
 0x20a   : > { %v427_v48 = vpop.permute.xlu1 %426 }
 0x20b   : > { %v429_v49 = vmul.f32 %v427_v48, %v423_v47 }
 0x228   : > { %v474_v53 = vpop.permute.xlu0 %473 }
 0x25a   : > { %v387_v50 = vpop.f32.mrb[0].mxu1 }
 0x25b   : > { %v430_v51 = vadd.f32 %v429_v49, %v387_v50  ;;  %v575_v52 = vpop.f32.mrb[1].mxu1 }
 0x25d   : > { %432 = vst.msk [vmem:[#allocation2] sm:$0x1f] %vm166_vm0, %v430_v51 }
 0x264   : > { %v438_v54 = vld [vmem:[#allocation2] sm:$0x1f] }
 0x265   : > { %v476_v55 = vmul.f32 %v474_v53, %v438_v54 }
 0x267   : > { %477 = vst.msk [vmem:[%s161_s27] sm:$0x1f] %vm166_vm0, %v476_v55 }
 0x268 PF: > { %s12_s11 = sadd.s32 1, %s641_s11   ;;  %s727_s9 = smov %s637_s10 }
 0x269   : > { %p9_p5 = scmp.ge.s32.totalorder %s12_s11, 4   ;;  %s728_s10 = smov %s730_s12 }
 0x26b   :  { %11 = sbr.rel (!%p9_p5) target bundleno = 2 (0x2), region = 66 }

</bundles_post_ra>
